<compile_context>
chip_gen: v7x
topology: tpu7x:2x2x1
jax: 0.10.0
libtpu: 0.0.40
codegen_flags: <defaults>
</compile_context>

<pallas_src>
import functools
import math

import numpy as np

import jax
import jax.numpy as jnp
from jax import lax
from jax.experimental import pallas as pl
from jax.experimental.pallas import tpu as pltpu


# ---------------------------------------------------------------------------
# Bilinear resize matrices (host glue, cached per (H, W))
# ---------------------------------------------------------------------------
def _bilinear_matrix(out_size: int, in_size: int) -> jnp.ndarray:
    """(out, in) matrix reproducing F.interpolate(mode='bilinear',
    align_corners=False) along a single axis.  Rows sum to 1."""
    dst = jnp.arange(out_size, dtype=jnp.float32)
    scale = in_size / out_size
    src = jnp.clip((dst + 0.5) * scale - 0.5, 0.0, float(in_size - 1))
    lo = jnp.floor(src).astype(jnp.int32)
    hi = jnp.minimum(lo + 1, in_size - 1)
    frac = src - lo.astype(jnp.float32)
    rows = jnp.arange(out_size)
    w = jnp.zeros((out_size, in_size), jnp.float32)
    w = w.at[rows, lo].add(1.0 - frac)
    w = w.at[rows, hi].add(frac)
    return w


def _composed_resize_matrix(in_size: int, n_stages: int, multiplier: float):
    """Compose n_stages of 1-D bilinear rescale into one matrix (resize is linear)."""
    size, mat = in_size, None
    for _ in range(n_stages):
        new_size = int(math.floor(size * multiplier))
        m = _bilinear_matrix(new_size, size)
        mat = m if mat is None else m @ mat
        size = new_size
    return mat


# ---------------------------------------------------------------------------
# VMEM budgeting (tile-padded estimates, capacity-derived cap)
# ---------------------------------------------------------------------------
def _round_up(x, m):
    return -(-x // m) * m


def _padded_block_bytes(shape, dtype):
    """Block bytes after Mosaic (sublane, lane) tiling: last dim -> mult. of 128,
    second-to-last -> mult. of 8 * (32 bits / itemsize)."""
    it = np.dtype(dtype).itemsize
    dims = list(shape)
    if dims:
        dims[-1] = _round_up(dims[-1], 128)
    if len(dims) >= 2:
        dims[-2] = _round_up(dims[-2], 8 * max(1, 4 // it))
    n = 1
    for d in dims:
        n *= d
    return n * it


_VMEM_BUDGET = None


def _vmem_budget():
    """~75% of physical VMEM (~48 MiB on v7x, ~96 MiB on v5e/v6e)."""
    global _VMEM_BUDGET
    if _VMEM_BUDGET is None:
        cap = None
        try:
            cap = getattr(pltpu.get_tpu_info(), "vmem_capacity_bytes", None)
        except Exception:
            cap = None
        if not cap:
            cap = 64 * 2 ** 20  # conservative (v7x-sized) fallback
        _VMEM_BUDGET = int(cap) * 3 // 4
    return _VMEM_BUDGET


def _vmem_limit(est_bytes):
    budget = _vmem_budget()
    return int(min(budget, max(32 * 2 ** 20, int(est_bytes) + 4 * 2 ** 20)))


# ---------------------------------------------------------------------------
# Single-buffered (Buffered(1)) grid-invariant weights, probed once
# ---------------------------------------------------------------------------
_BUFFERED_WEIGHTS = None


def _probe_kernel(w_ref, o_ref):
    o_ref[...] = w_ref[...] + 1.0


def _buffered_weights_supported():
    """pipeline_mode=pl.Buffered(1) halves resident-weight VMEM; probe once and
    fall back to default double-buffering if the installed JAX rejects it."""
    global _BUFFERED_WEIGHTS
    if _BUFFERED_WEIGHTS is None:
        try:
            out = pl.pallas_call(
                _probe_kernel,
                out_shape=jax.ShapeDtypeStruct((32, 128), jnp.float32),
                grid=(4,),
                in_specs=[pl.BlockSpec((8, 128), lambda i: (0, 0),
                                       pipeline_mode=pl.Buffered(1))],
                out_specs=pl.BlockSpec((8, 128), lambda i: (i, 0)),
            )(jnp.zeros((8, 128), jnp.float32))
            _BUFFERED_WEIGHTS = bool(jnp.allclose(out, 1.0))
        except Exception:
            _BUFFERED_WEIGHTS = False
    return _BUFFERED_WEIGHTS


def _const_spec(shape, index_map):
    if _buffered_weights_supported():
        return pl.BlockSpec(shape, index_map, pipeline_mode=pl.Buffered(1))
    return pl.BlockSpec(shape, index_map)


# ---------------------------------------------------------------------------
# Pallas kernels
# ---------------------------------------------------------------------------
def _resize_matmul_kernel(x_ref, a_ref, wwt_ref, *rest, has_bias, transposed_out):
    # x_ref  : (1, rows_in, Win)           rows_in = (channel block) * Hin
    # a_ref  : (rows_out, rows_in) bf16    kron(conv_w, Wh) or kron(I, Wh)
    #          (stored pre-transposed (rows_in, rows_out) when transposed_out)
    # wwt_ref: (Win, tile_w) bf16          Ww^T width tile
    # b_ref  : (rows_out, 1) / (1, rows_out)  optional bias rows
    # o_ref  : (1, rows_out, tile_w)  or (1, tile_w, rows_out) when transposed_out
    if has_bias:
        b_ref, o_ref = rest
    else:
        (o_ref,) = rest
    x = x_ref[0].astype(jnp.bfloat16)
    t = jnp.dot(x, wwt_ref[...], preferred_element_type=jnp.float32)   # (rows_in, tw)
    t = t.astype(jnp.bfloat16)
    if transposed_out:
        # y^T = t^T @ A^T, contracting dim 0 of both operands -> lane dim = rows_out,
        # so stores stay unmasked even when Wout < 128.
        y = lax.dot_general(t, a_ref[...], (((0,), (0,)), ((), ())),
                            preferred_element_type=jnp.float32)        # (tw, rows_out)
    else:
        y = jnp.dot(a_ref[...], t, preferred_element_type=jnp.float32)  # (rows_out, tw)
    if has_bias:
        y = y + b_ref[...]
    o_ref[0] = y.astype(o_ref.dtype)


def _channel_map_kernel(x_ref, w_ref, *rest, has_bias):
    # x_ref: (1, Cin, tile_hw); w_ref: (Cout, Cin) bf16; o_ref: (1, Cout, tile_hw)
    if has_bias:
        b_ref, o_ref = rest
    else:
        (o_ref,) = rest
    z = jnp.dot(w_ref[...], x_ref[0].astype(jnp.bfloat16),
                preferred_element_type=jnp.float32)
    if has_bias:
        z = z + b_ref[...]
    o_ref[0] = z.astype(o_ref.dtype)


# ---------------------------------------------------------------------------
# Planning helpers
# ---------------------------------------------------------------------------
def _plan_resize_tiles(rows_in, rows_out, win, wout, in_dtype, out_dtype):
    """Pick the output-width tile from the VMEM budget. Returns (tile_w, est, fits)."""
    budget = _vmem_budget()

    def est(tw):
        b = 2 * _padded_block_bytes((rows_in, win), in_dtype)            # x block (2 bufs)
        # weights counted x2 conservatively so the Buffered(1) fallback still fits
        b += 2 * _padded_block_bytes((rows_out, rows_in), jnp.bfloat16)  # A
        b += 2 * _padded_block_bytes((win, tw), jnp.bfloat16)            # Ww^T tile
        b += 2 * _padded_block_bytes((rows_out, tw), out_dtype)          # out block
        b += _padded_block_bytes((rows_in, win), jnp.bfloat16)           # x bf16 copy
        b += _padded_block_bytes((rows_in, tw), jnp.float32)             # t f32
        b += _padded_block_bytes((rows_in, tw), jnp.bfloat16)            # t bf16
        b += _padded_block_bytes((rows_out, tw), jnp.float32)            # y f32
        return b

    cands = ([wout] if wout <= 512 else []) + [t for t in (512, 256, 128) if t < wout]
    for tw in cands:
        e = est(tw)
        if e <= budget:
            return tw, e, True
    return cands[-1], est(cands[-1]), False


def _plan_channel_blocks(c, hin, hout, win, wout, in_dtype, out_dtype):
    """Largest channel block (a divisor of C, (8,.)-aligned) whose working set fits."""
    divisors = [d for d in range(c, 0, -1) if c % d == 0]
    plan = None
    for d in divisors:
        if d != c and ((d * hin) % 8 or (d * hout) % 8):
            continue
        tw, e, fits = _plan_resize_tiles(d * hin, d * hout, win, wout, in_dtype, out_dtype)
        plan = (d, tw, e)
        if fits:
            return plan
    # TODO(synk): if even a single channel exceeds the budget the image needs
    # input-side spatial tiling (reduction over Win/Hin blocks); best effort here.
    return plan


# ---------------------------------------------------------------------------
# pallas_call wrappers
# ---------------------------------------------------------------------------
def _resize_matmul_pallas(x, a_block, wwt, bias_arr, *, rows_out_block, n_row_blocks,
                          hout, wout, tile_w, transposed_out, vmem_est, out_dtype):
    n, c, hin, win = x.shape
    rows_in_block = (c * hin) // n_row_blocks
    xf = x.reshape(n, c * hin, win)                 # leading-dim reshape only
    has_bias = bias_arr is not None
    n_w_tiles = pl.cdiv(wout, tile_w)
    grid = (n, n_row_blocks, n_w_tiles)

    in_specs = [
        pl.BlockSpec((1, rows_in_block, win), lambda i, cb, j: (i, cb, 0)),
        _const_spec(a_block.shape, lambda i, cb, j: (0, 0)),
        pl.BlockSpec((win, tile_w), lambda i, cb, j: (0, j)),
    ]
    args = [xf, a_block, wwt]
    if has_bias:
        in_specs.append(_const_spec(bias_arr.shape, lambda i, cb, j: (0, 0)))
        args.append(bias_arr)

    rows_out_total = n_row_blocks * rows_out_block
    if transposed_out:
        out_shape = jax.ShapeDtypeStruct((n, wout, rows_out_total), out_dtype)
        out_spec = pl.BlockSpec((1, tile_w, rows_out_block), lambda i, cb, j: (i, j, cb))
    else:
        out_shape = jax.ShapeDtypeStruct((n, rows_out_total, wout), out_dtype)
        out_spec = pl.BlockSpec((1, rows_out_block, tile_w), lambda i, cb, j: (i, cb, j))

    kernel = functools.partial(_resize_matmul_kernel, has_bias=has_bias,
                               transposed_out=transposed_out)
    out = pl.pallas_call(
        kernel,
        out_shape=out_shape,
        grid=grid,
        in_specs=in_specs,
        out_specs=out_spec,
        compiler_params=pltpu.CompilerParams(
            dimension_semantics=("parallel", "parallel", "parallel"),
            vmem_limit_bytes=_vmem_limit(vmem_est)),
    )(*args)

    c_out_total = rows_out_total // hout
    if transposed_out:
        out = jnp.transpose(out, (0, 2, 1))         # tiny, already-downscaled output
    return out.reshape(n, c_out_total, hout, wout)


def _channel_map_pallas(x, w_bf16, bias_col, out_dtype=None):
    n, cin, h, wd = x.shape
    cout = int(w_bf16.shape[0])
    hw = h * wd
    out_dtype = out_dtype if out_dtype is not None else x.dtype
    budget = _vmem_budget()

    def est(t):
        b = 2 * _padded_block_bytes((cin, t), x.dtype)
        b += 2 * _padded_block_bytes((cout, cin), jnp.bfloat16)
        b += 2 * _padded_block_bytes((cout, t), out_dtype)
        b += _padded_block_bytes((cin, t), jnp.bfloat16)
        b += _padded_block_bytes((cout, t), jnp.float32)
        return b

    cands = ([hw] if hw <= 8192 else []) + [t for t in (8192, 4096, 2048, 1024, 512)
                                            if t < hw]
    tile = cands[-1]
    for t in cands:
        if est(t) <= budget:
            tile = t
            break

    xf = x.reshape(n, cin, hw)
    has_bias = bias_col is not None
    in_specs = [
        pl.BlockSpec((1, cin, tile), lambda i, j: (i, 0, j)),
        _const_spec((cout, cin), lambda i, j: (0, 0)),
    ]
    args = [xf, w_bf16]
    if has_bias:
        in_specs.append(_const_spec((cout, 1), lambda i, j: (0, 0)))
        args.append(bias_col)

    kernel = functools.partial(_channel_map_kernel, has_bias=has_bias)
    out = pl.pallas_call(
        kernel,
        out_shape=jax.ShapeDtypeStruct((n, cout, hw), out_dtype),
        grid=(n, pl.cdiv(hw, tile)),
        in_specs=in_specs,
        out_specs=pl.BlockSpec((1, cout, tile), lambda i, j: (i, 0, j)),
        compiler_params=pltpu.CompilerParams(
            dimension_semantics=("parallel", "parallel"),
            vmem_limit_bytes=_vmem_limit(est(tile))),
    )(*args)
    return out.reshape(n, cout, h, wd)


# ---------------------------------------------------------------------------
# Module
# ---------------------------------------------------------------------------
class SpatialRescaler:
    _KRON_BYTES_LIMIT = 8 * 2 ** 20   # dense kron(conv_w, Wh) above this -> separable path

    def __init__(self, n_stages=1, method="bilinear", multiplier=0.5,
                 in_channels=3, out_channels=None, bias=False, *, key=None):
        assert n_stages >= 0
        assert method in ["nearest", "linear", "bilinear", "trilinear", "bicubic", "area"]
        if method != "bilinear":
            # TODO(synk): only 'bilinear' (the module default) has the separable
            # matrix formulation implemented here; other modes are not translated.
            raise NotImplementedError("only method='bilinear' is implemented")
        self.n_stages = n_stages
        self.multiplier = multiplier
        self.in_channels = in_channels
        self.remap_output = out_channels is not None
        self.out_channels = out_channels if self.remap_output else in_channels
        self.has_bias = bool(bias) and self.remap_output
        self.weight = None
        self.weight_bf16 = None
        self.bias = None
        self.bias_col = None
        if self.remap_output:
            print(f"Spatial Rescaler mapping from {in_channels} to {out_channels} "
                  f"channels after resizing.")
            key = jax.random.PRNGKey(0) if key is None else key
            wkey, bkey = jax.random.split(key)
            bound = 1.0 / math.sqrt(in_channels)   # nn.Conv2d(kernel=1) default init
            self.weight = jax.random.uniform(
                wkey, (out_channels, in_channels), jnp.float32, -bound, bound)
            self.weight_bf16 = self.weight.astype(jnp.bfloat16)
            if self.has_bias:
                self.bias = jax.random.uniform(
                    bkey, (out_channels,), jnp.float32, -bound, bound)
                self.bias_col = self.bias.reshape(-1, 1)
        self._cache = {}

    # -- cached constants / plans --------------------------------------------
    def _resize_mats(self, h, w):
        key = ("mats", h, w)
        hit = self._cache.get(key)
        if hit is None:
            wh = _composed_resize_matrix(h, self.n_stages, self.multiplier)
            ww = _composed_resize_matrix(w, self.n_stages, self.multiplier)
            hout, wout = int(wh.shape[0]), int(ww.shape[0])
            assert hout > 0 and wout > 0, "resize collapses to zero size"
            hit = (wh, ww.T.astype(jnp.bfloat16), hout, wout)
            self._cache[key] = hit
        return hit

    def _fused_remap_plan(self, h, w, dtype):
        key = ("fused", h, w, np.dtype(dtype).name)
        hit = self._cache.get(key)
        if hit is not None:
            return hit
        wh, wwt, hout, wout = self._resize_mats(h, w)
        rows_in, rows_out = self.in_channels * h, self.out_channels * hout
        kron_bytes = 2 * rows_in * rows_out
        tile_w, est, fits = _plan_resize_tiles(rows_in, rows_out, w, wout, dtype, dtype)
        plan = {"use_fused": bool(kron_bytes <= self._KRON_BYTES_LIMIT and fits)}
        if plan["use_fused"]:
            transposed = (wout < 128) and (rows_out > wout)
            a = jnp.kron(self.weight, wh).astype(jnp.bfloat16)
            if transposed:
                a = a.T
            bias_arr = None
            if self.has_bias:
                brow = jnp.repeat(self.bias, hout)
                bias_arr = brow.reshape(1, -1) if transposed else brow.reshape(-1, 1)
            plan.update(a=a, wwt=wwt, bias=bias_arr, hout=hout, wout=wout,
                        rows_out=rows_out, tile_w=tile_w, est=est, transposed=transposed)
        self._cache[key] = plan
        return plan

    def _identity_resize_plan(self, c, h, w, dtype):
        key = ("ident", c, h, w, np.dtype(dtype).name)
        hit = self._cache.get(key)
        if hit is not None:
            return hit
        wh, wwt, hout, wout = self._resize_mats(h, w)
        tc, tile_w, est = _plan_channel_blocks(c, h, hout, w, wout, dtype, dtype)
        rows_out = tc * hout
        n_blocks = c // tc
        transposed = (wout < 128 and rows_out > wout
                      and (n_blocks == 1 or rows_out % 128 == 0))
        a = jnp.kron(jnp.eye(tc, dtype=jnp.float32), wh).astype(jnp.bfloat16)
        if transposed:
            a = a.T
        plan = dict(a=a, wwt=wwt, hout=hout, wout=wout, rows_out=rows_out,
                    n_blocks=n_blocks, tile_w=tile_w, est=est, transposed=transposed)
        self._cache[key] = plan
        return plan

    def _run_identity_resize(self, x, plan, out_dtype):
        return _resize_matmul_pallas(
            x, plan["a"], plan["wwt"], None,
            rows_out_block=plan["rows_out"], n_row_blocks=plan["n_blocks"],
            hout=plan["hout"], wout=plan["wout"], tile_w=plan["tile_w"],
            transposed_out=plan["transposed"], vmem_est=plan["est"],
            out_dtype=out_dtype)

    # -- forward --------------------------------------------------------------
    def __call__(self, x):
        n, c, h, w = x.shape
        assert c == self.in_channels
        out_dtype = x.dtype

        if self.n_stages == 0:
            if not self.remap_output:
                return x
            return _channel_map_pallas(x, self.weight_bf16, self.bias_col,
                                       out_dtype=out_dtype)

        if not self.remap_output:
            plan = self._identity_resize_plan(c, h, w, x.dtype)
            return self._run_identity_resize(x, plan, out_dtype)

        plan = self._fused_remap_plan(h, w, x.dtype)
        if plan["use_fused"]:
            return _resize_matmul_pallas(
                x, plan["a"], plan["wwt"], plan["bias"],
                rows_out_block=plan["rows_out"], n_row_blocks=1,
                hout=plan["hout"], wout=plan["wout"], tile_w=plan["tile_w"],
                transposed_out=plan["transposed"], vmem_est=plan["est"],
                out_dtype=out_dtype)

        # Separable two-call path: the dense kron would be large (e.g. one-hot
        # segmentation inputs) or not fit VMEM.  The 1x1 conv and bilinear resize
        # commute (resize rows sum to 1, so the bias passes through unchanged);
        # apply the channel map first when it shrinks the data, bf16 intermediate.
        if self.out_channels <= self.in_channels:
            mid = _channel_map_pallas(x, self.weight_bf16, self.bias_col,
                                      out_dtype=jnp.bfloat16)
            plan2 = self._identity_resize_plan(self.out_channels, h, w, mid.dtype)
            return self._run_identity_resize(mid, plan2, out_dtype)
        plan2 = self._identity_resize_plan(c, h, w, x.dtype)
        mid = self._run_identity_resize(x, plan2, jnp.bfloat16)
        return _channel_map_pallas(mid, self.weight_bf16, self.bias_col,
                                   out_dtype=out_dtype)

    def encode(self, x):
        return self(x)


# ---------------------------------------------------------------------------
# Demo / self-check
# ---------------------------------------------------------------------------
if __name__ == "__main__":
    root = jax.random.PRNGKey(0)
    kx1, kx2, kx3, kx4, kx5, kp1, kp3, kp4 = jax.random.split(root, 8)

    def resize_ref(x, n_stages, mult):
        if n_stages == 0:
            return x
        wh = _composed_resize_matrix(x.shape[2], n_stages, mult)
        ww = _composed_resize_matrix(x.shape[3], n_stages, mult)
        r = jnp.einsum("oh,nchw->ncow", wh, x)
        r = jnp.einsum("vw,nchw->nchv", ww, r)
        return r

    def check(y, r, shape, tag):
        assert y.shape == shape, (tag, y.shape, shape)
        err = float(jnp.max(jnp.abs(y.astype(jnp.float32) - r.astype(jnp.float32))))
        assert err < 5e-2, (tag, err)

    # 1) resize + 1x1 conv + bias, Wout<128 -> fused kron kernel, lane-dense (transposed) store
    x1 = jax.random.normal(kx1, (2, 4, 16, 16), jnp.float32)
    m1 = SpatialRescaler(n_stages=1, multiplier=0.5, in_channels=4,
                         out_channels=8, bias=True, key=kp1)
    y1 = jax.block_until_ready(m1(x1))
    r1 = resize_ref(x1, 1, 0.5)
    r1 = jnp.einsum("kc,nchw->nkhw", m1.weight, r1) + m1.bias.reshape(1, -1, 1, 1)
    check(y1, r1, (2, 8, 8, 8), "fused_remap")

    # 2) two-stage resize, no channel map -> block-diagonal kron(I_C, Wh) path
    x2 = jax.random.normal(kx2, (2, 3, 16, 16), jnp.float32)
    m2 = SpatialRescaler(n_stages=2, multiplier=0.5, in_channels=3)
    y2 = jax.block_until_ready(m2(x2))
    check(y2, resize_ref(x2, 2, 0.5), (2, 3, 4, 4), "resize_only")

    # 3) n_stages=0: channel map only (HW-tiled), no bias
    x3 = jax.random.normal(kx3, (2, 4, 8, 8), jnp.float32)
    m3 = SpatialRescaler(n_stages=0, in_channels=4, out_channels=6, bias=False, key=kp3)
    y3 = jax.block_until_ready(m3(x3))
    r3 = jnp.einsum("kc,nchw->nkhw", m3.weight, x3)
    check(y3, r3, (2, 6, 8, 8), "channel_map")

    # 4) separable two-call path (conv first, then resize), forced via kron limit
    x4 = jax.random.normal(kx4, (2, 8, 16, 16), jnp.float32)
    m4 = SpatialRescaler(n_stages=1, multiplier=0.5, in_channels=8,
                         out_channels=4, bias=True, key=kp4)
    m4._KRON_BYTES_LIMIT = 0
    y4 = jax.block_until_ready(m4(x4))
    r4 = resize_ref(x4, 1, 0.5)
    r4 = jnp.einsum("kc,nchw->nkhw", m4.weight, r4) + m4.bias.reshape(1, -1, 1, 1)
    check(y4, r4, (2, 4, 8, 8), "separable")

    # 5) Wout >= 128 -> untransposed (already lane-dense) output path
    x5 = jax.random.normal(kx5, (1, 3, 16, 256), jnp.float32)
    m5 = SpatialRescaler(n_stages=1, multiplier=0.5, in_channels=3)
    y5 = jax.block_until_ready(m5(x5))
    check(y5, resize_ref(x5, 1, 0.5), (1, 3, 8, 128), "resize_wide")

    print("KERNEL_OK")
</pallas_src>

<mosaic_0001>
module attributes {stable_mosaic.version = 11 : i64} {
  func.func @_probe_kernel(%arg0: i32, %arg1: memref<8x128xf32, #tpu.memory_space<vmem>>, %arg2: memref<8x128xf32, #tpu.memory_space<vmem>>) attributes {dimension_semantics = [#tpu.dimension_semantics<arbitrary>], iteration_bounds = array<i64: 4>, scalar_prefetch = 0 : i64, scratch_operands = 0 : i64, tpu.core_type = #tpu.core_type<tc>, window_params = [{pipeline_mode = #tpu.pipeline_mode<synchronous>, transform_indices = @transform_0, window_bounds = array<i64: 8, 128>}, {transform_indices = @transform_1, window_bounds = array<i64: 8, 128>}]} {
    %c0 = arith.constant 0 : index
    %c0_0 = arith.constant 0 : index
    %0 = vector.load %arg1[%c0, %c0_0] : memref<8x128xf32, #tpu.memory_space<vmem>>, vector<8x128xf32>
    %cst = arith.constant 1.000000e+00 : f32
    %1 = vector.broadcast %cst : f32 to vector<8x128xf32>
    %2 = arith.addf %0, %1 : vector<8x128xf32>
    %c0_1 = arith.constant 0 : index
    %c0_2 = arith.constant 0 : index
    %3 = vector.load %arg2[%c0_1, %c0_2] : memref<8x128xf32, #tpu.memory_space<vmem>>, vector<8x128xf32>
    tpu.vector_store %arg2[%c0_1, %c0_2], %2 {strides = array<i32>} : memref<8x128xf32, #tpu.memory_space<vmem>>, vector<8x128xf32>,
    return
  }
  func.func @transform_0(%arg0: i32) -> (i32, i32) {
    %c0_i32 = arith.constant 0 : i32
    %c0_i32_0 = arith.constant 0 : i32
    %c0_i32_1 = arith.constant 0 : i32
    return %c0_i32, %c0_i32_0 : i32, i32
  }
  func.func @transform_1(%arg0: i32) -> (i32, i32) {
    %c0_i32 = arith.constant 0 : i32
    %c0_i32_0 = arith.constant 0 : i32
    return %arg0, %c0_i32 : i32, i32
  }
}

module attributes {stable_mosaic.version = 11 : i64} {
  func.func @_resize_matmul_kernel(%arg0: i32, %arg1: i32, %arg2: i32, %arg3: memref<1x64x16xf32, #tpu.memory_space<vmem>>, %arg4: memref<64x64xbf16, #tpu.memory_space<vmem>>, %arg5: memref<16x8xbf16, #tpu.memory_space<vmem>>, %arg6: memref<1x64xf32, #tpu.memory_space<vmem>>, %arg7: memref<1x8x64xf32, #tpu.memory_space<vmem>>) attributes {dimension_semantics = [#tpu.dimension_semantics<parallel>, #tpu.dimension_semantics<parallel>, #tpu.dimension_semantics<parallel>], iteration_bounds = array<i64: 2, 1, 1>, scalar_prefetch = 0 : i64, scratch_operands = 0 : i64, tpu.core_type = #tpu.core_type<tc>, window_params = [{transform_indices = @transform_0, window_bounds = array<i64: 1, 64, 16>}, {pipeline_mode = #tpu.pipeline_mode<synchronous>, transform_indices = @transform_1, window_bounds = array<i64: 64, 64>}, {transform_indices = @transform_2, window_bounds = array<i64: 16, 8>}, {pipeline_mode = #tpu.pipeline_mode<synchronous>, transform_indices = @transform_3, window_bounds = array<i64: 1, 64>}, {transform_indices = @transform_4, window_bounds = array<i64: 1, 8, 64>}]} {
    %c0 = arith.constant 0 : index
    %c0_0 = arith.constant 0 : index
    %c0_1 = arith.constant 0 : index
    %0 = vector.load %arg3[%c0, %c0_0, %c0_1] : memref<1x64x16xf32, #tpu.memory_space<vmem>>, vector<1x64x16xf32>
    %1 = vector.shape_cast %0 : vector<1x64x16xf32> to vector<64x16xf32>
    %2 = arith.truncf %1 : vector<64x16xf32> to vector<64x16xbf16>
    %c0_2 = arith.constant 0 : index
    %c0_3 = arith.constant 0 : index
    %3 = vector.load %arg5[%c0_2, %c0_3] : memref<16x8xbf16, #tpu.memory_space<vmem>>, vector<16x8xbf16>
    %cst = arith.constant dense<0.000000e+00> : vector<64x8xf32>
    %4 = tpu.matmul %2, %3, %cst {dimension_numbers = #tpu.dot_dimension_numbers<[1], [0], [0], [1], [0, 0, 1, 1], [], []>} : vector<64x16xbf16>, vector<16x8xbf16>, vector<64x8xf32> -> vector<64x8xf32>
    %5 = arith.truncf %4 : vector<64x8xf32> to vector<64x8xbf16>
    %c0_4 = arith.constant 0 : index
    %c0_5 = arith.constant 0 : index
    %6 = vector.load %arg4[%c0_4, %c0_5] : memref<64x64xbf16, #tpu.memory_space<vmem>>, vector<64x64xbf16>
    %cst_6 = arith.constant dense<0.000000e+00> : vector<8x64xf32>
    %7 = tpu.matmul %5, %6, %cst_6 {dimension_numbers = #tpu.dot_dimension_numbers<[0], [0], [1], [1], [0, 1, 1, 1], [], []>} : vector<64x8xbf16>, vector<64x64xbf16>, vector<8x64xf32> -> vector<8x64xf32>
    %c0_7 = arith.constant 0 : index
    %c0_8 = arith.constant 0 : index
    %8 = vector.load %arg6[%c0_7, %c0_8] : memref<1x64xf32, #tpu.memory_space<vmem>>, vector<1x64xf32>
    %9 = vector.broadcast %8 : vector<1x64xf32> to vector<8x64xf32>
    %10 = arith.addf %7, %9 : vector<8x64xf32>
    %c0_9 = arith.constant 0 : index
    %c0_10 = arith.constant 0 : index
    %c0_11 = arith.constant 0 : index
    %11 = vector.load %arg7[%c0_9, %c0_10, %c0_11] : memref<1x8x64xf32, #tpu.memory_space<vmem>>, vector<1x8x64xf32>
    %12 = vector.shape_cast %11 : vector<1x8x64xf32> to vector<8x64xf32>
    %13 = vector.shape_cast %10 : vector<8x64xf32> to vector<1x8x64xf32>
    tpu.vector_store %arg7[%c0_9, %c0_10, %c0_11], %13 {strides = array<i32>} : memref<1x8x64xf32, #tpu.memory_space<vmem>>, vector<1x8x64xf32>,
    return
  }
  func.func @transform_0(%arg0: i32, %arg1: i32, %arg2: i32) -> (i32, i32, i32) {
    %c0_i32 = arith.constant 0 : i32
    %c0_i32_0 = arith.constant 0 : i32
    return %arg0, %arg1, %c0_i32 : i32, i32, i32
  }
  func.func @transform_1(%arg0: i32, %arg1: i32, %arg2: i32) -> (i32, i32) {
    %c0_i32 = arith.constant 0 : i32
    %c0_i32_0 = arith.constant 0 : i32
    %c0_i32_1 = arith.constant 0 : i32
    return %c0_i32, %c0_i32_0 : i32, i32
  }
  func.func @transform_2(%arg0: i32, %arg1: i32, %arg2: i32) -> (i32, i32) {
    %c0_i32 = arith.constant 0 : i32
    %c0_i32_0 = arith.constant 0 : i32
    return %c0_i32, %arg2 : i32, i32
  }
  func.func @transform_3(%arg0: i32, %arg1: i32, %arg2: i32) -> (i32, i32) {
    %c0_i32 = arith.constant 0 : i32
    %c0_i32_0 = arith.constant 0 : i32
    %c0_i32_1 = arith.constant 0 : i32
    return %c0_i32, %c0_i32_0 : i32, i32
  }
  func.func @transform_4(%arg0: i32, %arg1: i32, %arg2: i32) -> (i32, i32, i32) {
    %c0_i32 = arith.constant 0 : i32
    return %arg0, %arg2, %arg1 : i32, i32, i32
  }
}

</mosaic_0001>

<bundles_post_ra>
// kernel: tpu_custom_call.1
= control target key start
LH: loop header
LB: loop body
LE: loop exit
PB: predicated region body
PF: predicated region fallthrough
CT: control target
= control target key end

     0   :  { %6 = vsyncpa [#allocation3], 0  ;;  %s482_s0 = inlined_call_operand.hbm [shape: f32[8,128], index: 0, kind: input, shape index: {}]   ;;  %s483_s1 = inlined_call_operand.hbm [shape: f32[32,128], index: 1, kind: output, shape index: {}]  }
   0x1   :  { %7 = vsyncpa [#allocation4], 0 }
   0x2   :  { %9 = vsyncpa [#allocation4 + $0x1], 0  ;;  %s352_s6 = smov 0   ;;  %s354_s7 = smov 0  }
   0x3   :  { %s356_s8 = smov 0   ;;  %s358_s9 = smov 0  }
   0x4 LB: > { %s373_s10 = sadd.s32 4294967295, %s338_s9   ;;  %s184_s11 = sadd.s32 4294967294, %s338_s9   ;;  %s338_s9 = sphi %s358_s9, %s499_s9   ;;  %s334_s8 = sphi %s356_s8, %s498_s8   ;;  %s330_s7 = sphi %s354_s7, %s497_s7   ;;  %s326_s6 = sphi %s352_s6, %s496_s6  }
   0x5   : > { %s377_s12 = sadd.s32 1, %s338_s9   ;;  %s43_s13 = sadd.s32 1, %s334_s8 }
   0x6   : > { %s40_s14 = ssub.s32 %s338_s9, %s377_s12  ;;  %p53_p0 = scmp.ne.s32.totalorder %s334_s8, %s330_s7 }
   0x7   : > { %p41_p1 = scmp.eq.s32.totalorder %s40_s14, 0  ;;  %p54_p2 = scmp.eq.s32.totalorder %s373_s10, 3 }
   0x8   : > { %p59_p3 = scmp.ne.s32.totalorder %s330_s7, %s326_s6  ;;  %p60_p4 = scmp.eq.s32.totalorder %s184_s11, 3 }
   0x9   : > { %s388_s15 = scalar_select %p41_p1, %s334_s8, %s43_s13  }
   0xa   : > { %p390_p5 = por %p54_p2, %p53_p0  ;;  %p394_p6 = por %p60_p4, %p59_p3 }
   0xb   : > { %p185_p7 = scmp.ge.s32.totalorder %s338_s9, 1  ;;  %p67_p8 = scmp.lt.s32.totalorder %s338_s9, 5 }
   0xc   : > { %s487_s16 = scalar_select %p390_p5, 1, 0 }
   0xd   : > { %s488_s17 = scalar_select %p394_p6, 1, 0 }
   0xe   : > { %p484_p9 = scmp.eq.s32.totalorder %s373_s10, 0  ;;  %p401_p10 = pnand %p185_p7, %p67_p8 }
   0xf   : > { %s340_s19 = smov [#allocation2]   ;;  %s244_s24 = scalar_lea.hbm %s482_s0, 128 }
  0x10   : > { %s489_s18 = scalar_select %p401_p10, 1, 0 }
  0x11   : > { %s80_s20 = sshll.u32 %s340_s19, 4  ;;  %p200_p11 = pneg %p401_p10  ;;  %s81_s20 = int_to_ptr.vmem [resolvable:$true] %s80_s20 }
  0x12   : > { %p245_p13 = scmp.ne.s32.totalorder %s482_s0, %s244_s24  ;;  %p251_p3 = scmp.lt.u32.totalorder %s244_s24, %s482_s0 }
  0x13   : > { %p409_p12 = pnand %p484_p9, %p200_p11 }
  0x15   : > { %p246_p0 = pneg %p409_p12 }
  0x17   : > { %p247_p1 = pnand %p246_p0, %p245_p13 }
  0x19   : > { %p248_p2 = pneg %p247_p1 }
  0x1b   : > { %p253_p4 = pnand %p251_p3, %p248_p2 }
  0x1d   : > { %256 = shalt.err (!%p253_p4)
}
  0x1e   : > { %s257_s29 = scalar_lea.vmem %s81_s20, 128  ;;  %p265_p9 = scmp.lt.s32.totalorder %s81_s20, %s81_s20 }
  0x1f   : > { %p258_p7 = scmp.ne.s32.totalorder %s81_s20, %s257_s29  ;;  %p266_p6 = scmp.lt.s32.totalorder %s257_s29, %s257_s29 }
  0x21   : > { %p260_p8 = pnand %p258_p7, %p246_p0  ;;  %p267_p5 = por %p266_p6, %p265_p9 }
  0x23   : > { %p261_p11 = pneg %p260_p8 }
  0x25   : > { %p268_p10 = pnand %p267_p5, %p261_p11 }
  0x27   : > { %271 = shalt.err (!%p268_p10)
}
  0x28   : > { %203 = dma.hbm_to_vmem [thread:$0]  (!%p409_p12), %s482_s0, 128, %s81_s20, [#allocation3]  }
  0x29   : > { %p491_p13 = scmp.ne.s32.totalorder %s489_s18, 0 }
  0x2a   : > { %p492_p1 = scmp.eq.s32.totalorder (!%p491_p13), %s373_s10, 0 }
  0x2b   : > { %93 = sbr.rel (%p491_p13) target bundleno = 77 (0x4d), region = 24 }
  0x32   : > { %317 = dma.done.wait (%p492_p1), [#allocation3], 128   ;;  %p493_p0 = pmov %p492_p1 }
  0x33   : > { %s105_s3 = sand.u32 1, %s330_s7   ;;  %s191_s13 = sshll.u32 %s373_s10, 7  ;;  %v108_v0 = vld [vmem:[#allocation2] sm:$0xff] }
  0x34   : > { %319 = vsyncadd (%p493_p0), [#allocation3], 4294967168  ;;  %s189_s4 = sshll.u32 %s105_s3, 3  ;;  %v109_v1 = vadd.f32 1.0, %v108_v0  ;;  %s442_s19 = scalar_lea.hbm %s483_s1, %s191_s13 }
  0x35   : > { %s107_s5 = scalar_lea.vmem [#allocation5], %s189_s4  ;;  %s112_s20 = scalar_lea.sflag [#allocation4], %s105_s3 }
  0x36   : > { %s125_s11 = sshll.u32 %s107_s5, 4  ;;  %110 = vst [vmem:[%s107_s5] sm:$0xff] %v109_v1  ;;  %p494_p6 = scmp.ne.s32.totalorder %s487_s16, 0  ;;  %s437_s11 = int_to_ptr.vmem [resolvable:$true] %s125_s11 }
  0x37   : > { %s272_s21 = scalar_lea.vmem %s437_s11, 128  ;;  %s341_s10 = smov [#allocation5]  }
  0x38   : > { %p273_p5 = scmp.ne.s32.totalorder %s437_s11, %s272_s21  ;;  %s276_s22 = sshll.u32 %s341_s10, 4  ;;  %s277_s22 = int_to_ptr.vmem [resolvable:$false] %s276_s22 }
  0x39   : > { %s278_s23 = scalar_lea.vmem %s277_s22, 256  ;;  %p279_p12 = scmp.lt.s32.totalorder %s437_s11, %s277_s22 }
  0x3a   : > { %p274_p9 = pnand %p273_p5, %p494_p6  ;;  %p280_p2 = scmp.lt.s32.totalorder %s278_s23, %s272_s21 }
  0x3c   : > { %p275_p10 = pneg %p274_p9  ;;  %p281_p3 = por %p280_p2, %p279_p12 }
  0x3e   : > { %p282_p4 = pnand %p281_p3, %p275_p10 }
  0x40   : > { %285 = shalt.err (!%p282_p4)
}
  0x41   : > { %s286_s24 = scalar_lea.hbm %s442_s19, 128  ;;  %s290_s27 = scalar_lea.hbm %s483_s1, 512 }
  0x42   : > { %p287_p7 = scmp.ne.s32.totalorder %s442_s19, %s286_s24  ;;  %p291_p13 = scmp.lt.u32.totalorder %s442_s19, %s483_s1 }
  0x43   : > { %p292_p1 = scmp.lt.u32.totalorder %s290_s27, %s286_s24  ;;  %p294_p5 = scmp.lt.u32.totalorder %s286_s24, %s442_s19 }
  0x44   : > { %p288_p8 = pnand %p287_p7, %p494_p6 }
  0x45   : > { %p293_p0 = por %p292_p1, %p291_p13 }
  0x46   : > { %p289_p11 = pneg %p288_p8 }
  0x47   : > { %p295_p9 = por %p294_p5, %p293_p0 }
  0x49   : > { %p296_p10 = pnand %p295_p9, %p289_p11 }
  0x4b   : > { %299 = shalt.err (!%p296_p10)
}
  0x4c   : > { %198 = dma.vmem_to_hbm [thread:$0]  (%p494_p6), %s437_s11, 128, %s442_s19, %s112_s20  }
  0x4d PF: > { %p210_p12 = scmp.ge.s32.totalorder %s338_s9, 2  ;;  %s137_s30 = sand.u32 1, %s326_s6  }
  0x4e   : > { %p495_p2 = scmp.ne.s32.totalorder %s488_s17, 0  ;;  %s138_s2 = scalar_lea.sflag [#allocation4], %s137_s30 }
  0x50   : > { %p205_p3 = pnand %p210_p12, %p495_p2 }
  0x52   : > { %321 = dma.done.wait (!%p205_p3), %s138_s2, 128  }
  0x53   : > { %323 = vsyncadd (!%p205_p3), %s138_s2, 4294967168  ;;  %p12_p4 = scmp.ge.s32.totalorder %s377_s12, 6   ;;  %s496_s6 = smov %s330_s7 }
  0x54   : > { %s497_s7 = smov %s334_s8  ;;  %s498_s8 = smov %s388_s15 }
  0x55   : > { %s499_s9 = smov %s377_s12  ;;  %14 = sbr.rel (!%p12_p4) target bundleno = 4 (0x4), region = 61 }
  0x5c   :  { %143 = vsyncpa [#allocation3], 1 }
  0x5d   :  { %145 = vsyncpa [#allocation3 + $0x1], 1 }
  0x5e   :  { %146 = vsyncpa [#allocation4], 1 }
  0x5f   :  { %148 = vsyncpa [#allocation4 + $0x1], 1 }

// kernel: tpu_custom_call.1
= control target key start
LH: loop header
LB: loop body
LE: loop exit
PB: predicated region body
PF: predicated region fallthrough
CT: control target
= control target key end

     0   :  { %9 = vsyncpa [#allocation3], 0  ;;  %s924_s0 = inlined_call_operand.vmem [shape: f32[2,64,16], index: 0, kind: input, shape index: {}]   ;;  %s925_s1 = inlined_call_operand.vmem [shape: bf16[64,64], index: 1, kind: input, shape index: {}]   ;;  %s926_s2 = inlined_call_operand.vmem [shape: bf16[16,8], index: 2, kind: input, shape index: {}]   ;;  %s927_s3 = inlined_call_operand.vmem [shape: f32[1,64], index: 3, kind: input, shape index: {}]   ;;  %s928_s4 = inlined_call_operand.hbm [shape: f32[2,8,64], index: 4, kind: output, shape index: {}]  }
   0x1   :  { %11 = vsyncpa [#allocation3 + $0x1], 0  ;;  %s792_s15 = smov 0   ;;  %s794_s16 = smov 0  }
   0x2   :  { %s796_s17 = smov 0   ;;  %s798_s18 = smov 0  }
   0x3   :  { %s800_s19 = smov 0   ;;  %s802_s20 = smov 0  }
   0x4 LB: > { %s564_s21 = sadd.s32 4294967295, %s762_s20   ;;  %s565_s22 = sadd.s32 4294967294, %s762_s20   ;;  %s762_s20 = sphi %s802_s20, %s17_s20   ;;  %s758_s19 = sphi %s800_s19, %s935_s19   ;;  %s754_s18 = sphi %s798_s18, %s934_s18   ;;  %s750_s17 = sphi %s796_s17, %s933_s17   ;;  %s746_s16 = sphi %s794_s16, %s932_s16   ;;  %s742_s15 = sphi %s792_s15, %s931_s15  }
   0x5   : > { %s36_s23 = sadd.s32 1, %s758_s19  ;;  %s143_s24 = sadd.s32 1, %s750_s17 }
   0x6   : > { %p38_p0 = scmp.ge.s32.totalorder %s36_s23, 2  ;;  %p153_p1 = scmp.ne.s32.totalorder %s750_s17, %s746_s16 }
   0x7   : > { %p154_p2 = scmp.eq.s32.totalorder %s564_s21, 1  ;;  %p159_p3 = scmp.ne.s32.totalorder %s746_s16, %s742_s15 }
   0x8   : > { %s937_s23 = smov (%p38_p0, %s36_s23), 0  ;;  %p160_p5 = scmp.eq.s32.totalorder %s565_s22, 1 }
   0x9   : > { %p832_p4 = por %p154_p2, %p153_p1  ;;  %s136_s26 = ssub.s32 %s758_s19, %s937_s23 }
   0xa   : > { %p569_p6 = scmp.ge.s32.totalorder %s762_s20, 1  ;;  %p141_p7 = scmp.eq.s32.totalorder %s136_s26, 0 }
   0xb   : > { %p839_p8 = por %p160_p5, %p159_p3  ;;  %p204_p9 = scmp.lt.s32.totalorder %s762_s20, 3 }
   0xc   : > { %s845_s28 = scalar_select %p141_p7, %s750_s17, %s143_s24  }
   0xd   : > { %p205_p10 = pnand %p569_p6, %p204_p9 }
   0xe   : > { %v679_v0 = vld [vmem:[%s926_s2] sm:$0xff] (!%p205_p10)   ;;  %p239_p11 = scmp.lt.s32.totalorder (!%p205_p10), %s754_s18, 1  ;;  %vm273_vm0 = vcmask (!%p205_p10), 130048   ;;  %v764_v14 = vmov (!%p205_p10), 0.0   ;;  %vm765_vm1 = vmmov (!%p205_p10), 0   ;;  %v681_v15 = vld [vmem:[%s925_s1 + $0x8] sm:$0xff] (!%p205_p10)  }
   0xf   : > { %208 = sbr.rel (%p205_p10) target bundleno = 578 (0x242), region = 36  ;;  %599 = vmatprep.subr.bf16.mxu0 (!%p205_p10), %v679_v0  ;;  %v680_v13 = vld [vmem:[%s925_s1] sm:$0xff] (!%p205_p10)   ;;  %609 = vmatprep.subr.bf16.mxu1 (!%p205_p10), %v764_v14  ;;  %v682_v16 = vld [vmem:[%s925_s1 + $0x10] sm:$0xff] (!%p205_p10)   ;;  %v683_v17 = vld [vmem:[%s925_s1 + $0x18] sm:$0xff] (!%p205_p10)   ;;  %vm410_vm2 = vcmask (!%p205_p10), 523264   ;;  %s235_s26 = sand.u32 (!%p205_p10), 1, %s746_s16  }
  0x10   : > { %600 = vmatpush3.bf16.msra.mxu0 (!%p205_p10), %v679_v0  ;;  %617 = vmatprep.mubr.msk.bf16.mxu1 (!%p205_p10), %vm765_vm1, %v764_v14  ;;  %s570_s29 = sshll.u32 (!%p205_p10), %s235_s26, 3  ;;  %v578_v31 = vld [vmem:[%s927_s3] ss:$0 sm:$0xff] (!%p205_p10)  ;;  %s766_s13 = smov (!%p205_p10), [#allocation2]  }
  0x11   : > { %610 = vmatpush3.bf16.msra.mxu1 (!%p205_p10), %v680_v13  ;;  %s237_s7 = scalar_lea.vmem (!%p205_p10), [#allocation2], %s570_s29  ;;  %s688_s14 = sshll.u32 (!%p205_p10), %s766_s13, 4  ;;  %s689_s14 = int_to_ptr.vmem [resolvable:$false] %s688_s14 }
  0x12   : > { %611 = vmatprep.subr.bf16.mxu1 (!%p205_p10), %v764_v14  ;;  %s471_s8 = sshll.u32 (!%p205_p10), %s237_s7, 4  ;;  %s690_s21 = scalar_lea.vmem (!%p205_p10), %s689_s14, 256  ;;  %s878_s8 = int_to_ptr.vmem [resolvable:$true] %s471_s8 }
  0x13   : > { %s684_s12 = scalar_lea.vmem (!%p205_p10), %s878_s8, 128  ;;  %p691_p1 = scmp.lt.s32.totalorder (!%p205_p10), %s878_s8, %s689_s14 }
  0x14   : > { %p685_p12 = scmp.ne.s32.totalorder (!%p205_p10), %s878_s8, %s684_s12  ;;  %p692_p2 = scmp.lt.s32.totalorder (!%p205_p10), %s690_s21, %s684_s12 }
  0x15   : > { %612 = vmatpush3.bf16.msra.mxu1 (!%p205_p10), %v681_v15 }
  0x16   : > { %s240_s5 = scalar_select %p239_p11, %s754_s18, 1  ;;  %613 = vmatprep.subr.bf16.mxu1 %v764_v14 }
  0x17   : > { %p686_p13 = pnand %p685_p12, %p832_p4  ;;  %p693_p3 = por %p692_p2, %p691_p1 }
  0x18   : > { %s588_s6 = sshll.u32 %s240_s5, 6 }
  0x19   : > { %s246_s9 = scalar_lea.vmem %s924_s0, %s588_s6  ;;  %614 = vmatpush3.bf16.msra.mxu1 %v682_v16  ;;  %s585_s6 = sshll.u32 %s754_s18, 7 }
  0x1a   : > { %v253_v1 = vld [vmem:[%s246_s9] sm:$0xff]  ;;  %v254_v2 = vld [vmem:[%s246_s9 + $0x8] sm:$0xff]  ;;  %v255_v3 = vld [vmem:[%s246_s9 + $0x10] sm:$0xff]  ;;  %615 = vmatprep.subr.bf16.mxu1 %v764_v14  ;;  %s876_s11 = scalar_lea.hbm %s928_s4, %s585_s6  ;;  %s456_s18 = scalar_lea.sflag [#allocation3], %s235_s26 }
  0x1b   : > { %v261_v4 = vpack.c.bf16 %v254_v2, %v253_v1  ;;  %v256_v5 = vld [vmem:[%s246_s9 + $0x18] sm:$0xff]  ;;  %v257_v6 = vld [vmem:[%s246_s9 + $0x20] sm:$0xff]  ;;  %v258_v7 = vld [vmem:[%s246_s9 + $0x28] sm:$0xff]  ;;  %p687_p0 = pneg %p686_p13 }
  0x1c   : > { %v262_v8 = vpack.c.bf16 %v256_v5, %v255_v3  ;;  %v263_v9 = vpack.c.bf16 %v258_v7, %v257_v6  ;;  %v259_v10 = vld [vmem:[%s246_s9 + $0x30] sm:$0xff]  ;;  %v260_v11 = vld [vmem:[%s246_s9 + $0x38] sm:$0xff] }
  0x1d   : > { %601 = vmatprep.mubr.msk.bf16.mxu0 %vm273_vm0, %v261_v4  ;;  %v264_v12 = vpack.c.bf16 %v260_v11, %v259_v10  ;;  %616 = vmatpush3.bf16.msra.mxu1 %v683_v17  ;;  %p694_p5 = pnand %p693_p3, %p687_p0 }
  0x1e   : > { %602 = vmatmul.mubr.msk.bf16.vlgmr.msra.gmra.mrb[0].mxu0 %vm273_vm0, %v262_v8 }
  0x1f   : > { %605 = vmatprep.mubr.msk.bf16.mxu0 %vm273_vm0, %v263_v9 }
  0x26   : > { %606 = vmatmul.mubr.msk.bf16.gmra.mrb[4].mxu0 %vm273_vm0, %v264_v12 }
  0xf1   : > { %v603_v18 = vpop.f32.mrb[0].mxu0 }
  0xf2   : > { %v320_v19 = vpop.f32.mrb[1].mxu0 }
  0xf3   : > { %v604_v20 = vpop.f32.mrb[2].mxu0 }
  0xf4   : > { %v352_v21 = vpack.c.bf16 %v604_v20, %v603_v18  ;;  %v323_v22 = vpop.f32.mrb[3].mxu0 }
  0xf5   : > { %v351_v23 = vpack.c.bf16 %v323_v22, %v320_v19 }
  0xf7   : > { %370 = vxpose.xlu0.c.b16.start [1/4] (short) (narrow) %v351_v23, 16 }
  0xf9   : > { %v607_v24 = vpop.f32.mrb[4].mxu0 }
  0xfa   : > { %v336_v25 = vpop.f32.mrb[5].mxu0 }
  0xfb   : > { %371 = vxpose.xlu0.c.b16.cont [2/4] (short) (narrow) %v352_v21, 16  ;;  %v608_v26 = vpop.f32.mrb[6].mxu0 }
  0xfc   : > { %v354_v27 = vpack.c.bf16 %v608_v26, %v607_v24  ;;  %v339_v28 = vpop.f32.mrb[7].mxu0 }
  0xfd   : > { %v353_v29 = vpack.c.bf16 %v339_v28, %v336_v25 }
  0xff   : > { %372 = vxpose.xlu0.c.b16.cont [3/4] (short) (narrow) %v353_v29, 16 }
 0x103   : > { %373 = vxpose.xlu0.c.b16.end [4/4] (short) (narrow) %v354_v27, 16 }
 0x15d   : > { %v378_v30 = vpop.trf.xlu0 }
 0x15e   : > { %618 = vmatmul.mubr.msk.bf16.vlgmr.msra.gmra.mrb[0].mxu1 %vm410_vm2, %v378_v30 }
 0x231   : > { %v448_v32 = vpop.f32.mrb[0].mxu1 }
 0x232   : > { %v449_v33 = vadd.f32 %v578_v31, %v448_v32  ;;  %v619_v34 = vpop.f32.mrb[1].mxu1 }
 0x233   : > { %v451_v35 = vpop.f32.mrb[2].mxu1 }
 0x234   : > { %v620_v36 = vpop.f32.mrb[3].mxu1  ;;  %454 = vst.msk [vmem:[%s237_s7] sm:$0xff] %vm410_vm2, %v449_v33 }
 0x235   : > { %697 = shalt.err (!%p694_p5)
}
 0x236   : > { %s698_s22 = scalar_lea.hbm %s876_s11, 128  ;;  %s702_s29 = scalar_lea.hbm %s928_s4, 256 }
 0x237   : > { %p699_p6 = scmp.ne.s32.totalorder %s876_s11, %s698_s22  ;;  %p703_p10 = scmp.lt.u32.totalorder %s876_s11, %s928_s4 }
 0x238   : > { %p704_p11 = scmp.lt.u32.totalorder %s702_s29, %s698_s22  ;;  %p706_p13 = scmp.lt.u32.totalorder %s698_s22, %s876_s11 }
 0x239   : > { %p700_p7 = pnand %p699_p6, %p832_p4 }
 0x23a   : > { %p705_p12 = por %p704_p11, %p703_p10 }
 0x23b   : > { %p701_p9 = pneg %p700_p7 }
 0x23c   : > { %p707_p0 = por %p706_p13, %p705_p12 }
 0x23e   : > { %p708_p1 = pnand %p707_p0, %p701_p9 }
 0x240   : > { %711 = shalt.err (!%p708_p1)
}
 0x241   : > { %621 = dma.vmem_to_hbm [thread:$0]  (%p832_p4), %s878_s8, 128, %s876_s11, %s456_s18  }
 0x242 PF: > { %p627_p2 = scmp.ge.s32.totalorder %s762_s20, 2  ;;  %s483_s6 = sand.u32 1, %s742_s15  }
 0x243   : > { %s484_s7 = scalar_lea.sflag [#allocation3], %s483_s6 }
 0x244   : > { %p624_p3 = pnand %p627_p2, %p839_p8 }
 0x246   : > { %737 = dma.done.wait (!%p624_p3), %s484_s7, 128  }
 0x247   : > { %739 = vsyncadd (!%p624_p3), %s484_s7, 4294967168  ;;  %s17_s20 = sadd.s32 1, %s762_s20   ;;  %s931_s15 = smov %s746_s16 }
 0x248   : > { %p14_p5 = scmp.ge.s32.totalorder %s17_s20, 4   ;;  %s932_s16 = smov %s750_s17 }
 0x249   : > { %s933_s17 = smov %s845_s28  ;;  %s934_s18 = smov %s758_s19 }
 0x24a   : > { %s935_s19 = smov %s937_s23  ;;  %16 = sbr.rel (!%p14_p5) target bundleno = 4 (0x4), region = 74 }
 0x251   :  { %489 = vsyncpa [#allocation3], 1 }
 0x252   :  { %491 = vsyncpa [#allocation3 + $0x1], 1 }

</bundles_post_ra>
